<compile_context>
chip_gen: v7x
topology: tpu7x:2x2x1
jax: 0.10.0
libtpu: 0.0.40
codegen_flags: <defaults>
</compile_context>

<pallas_src>
import functools

import jax
import jax.numpy as jnp
from jax.experimental import pallas as pl
from jax.experimental.pallas import tpu as pltpu


def _unembed_kernel(x_ref, w_ref, b_ref, o_ref, acc_ref):
    k = pl.program_id(2)

    @pl.when(k == 0)
    def _():
        acc_ref[...] = jnp.zeros_like(acc_ref)

    # (tm, tk) @ (tk, tn) -> (tm, tn), f32 accumulation on the MXU.
    acc_ref[...] += jnp.dot(
        x_ref[...], w_ref[...], preferred_element_type=jnp.float32
    )

    @pl.when(k == pl.num_programs(2) - 1)
    def _():
        # Fuse the bias add with the single final store of this output tile.
        o_ref[...] = (acc_ref[...] + b_ref[...]).astype(o_ref.dtype)


def unembed_forward(x, W_U, b_U, *, tm=None, tn=None, tk=None):
    """Pallas unembedding.

    x:   (batch, position, d_model)
    W_U: (d_model, d_vocab)
    b_U: (d_vocab,)
    returns (batch, position, d_vocab)
    """
    B, S, D = x.shape
    Dw, V = W_U.shape
    assert Dw == D and b_U.shape == (V,)

    M = B * S
    x2 = x.reshape(M, D)
    b2 = b_U.reshape(1, V)

    # Tile choices: keep the output tile lane-dense (tn multiple of 128 when
    # possible) and as large as comfortably fits VMEM.
    if tm is None:
        tm = M if M <= 256 else 256
    if tn is None:
        tn = V if V <= 128 else 128
        if V > 512 and V % 512 == 0:
            tn = 512
    if tk is None:
        tk = D if D <= 512 else 512

    # Keep the demo simple: require even tiling (pad upstream for odd shapes).
    assert M % tm == 0 and V % tn == 0 and D % tk == 0, (M, V, D, tm, tn, tk)

    grid = (M // tm, V // tn, D // tk)

    # Explicit VMEM budget: double-buffered x/W/bias tiles + accumulator
    # scratch + output tile, with 2x headroom, clamped to a sane range.
    bytes_f32 = 4
    per_step = (
        2 * (tm * tk + tk * tn + tn) * bytes_f32   # double-buffered inputs
        + tm * tn * bytes_f32                      # accumulator scratch
        + 2 * tm * tn * bytes_f32                  # double-buffered output
    )
    vmem_limit = int(min(max(2 * per_step, 4 << 20), 96 << 20))

    grid_spec = pltpu.PrefetchScalarGridSpec(
        num_scalar_prefetch=0,
        grid=grid,
        in_specs=[
            pl.BlockSpec((tm, tk), lambda i, j, k: (i, k)),   # x (flattened)
            pl.BlockSpec((tk, tn), lambda i, j, k: (k, j)),   # W_U
            pl.BlockSpec((1, tn), lambda i, j, k: (0, j)),    # b_U
        ],
        out_specs=pl.BlockSpec((tm, tn), lambda i, j, k: (i, j)),
        scratch_shapes=[pltpu.VMEM((tm, tn), jnp.float32)],
    )

    out2 = pl.pallas_call(
        _unembed_kernel,
        out_shape=jax.ShapeDtypeStruct((M, V), x.dtype),
        grid_spec=grid_spec,
        compiler_params=pltpu.CompilerParams(
            dimension_semantics=("parallel", "parallel", "arbitrary"),
            vmem_limit_bytes=vmem_limit,
        ),
    )(x2, W_U, b2)

    return out2.reshape(B, S, V)


def unembed_reference(x, W_U, b_U):
    """Pure-JAX reference mirroring the PyTorch forward exactly."""
    return jnp.einsum("bpd,dv->bpv", x, W_U) + b_U


if __name__ == "__main__":
    # Small shapes consistent with the module: batch=2, seq=8, d_model=32,
    # d_vocab=512 (multiple of 128 so the output tiles are lane-dense).
    batch, seq, d_model, d_vocab = 2, 8, 32, 512
    init_range = 0.02

    key = jax.random.PRNGKey(0)
    k_x, k_w, k_b = jax.random.split(key, 3)
    x = jax.random.normal(k_x, (batch, seq, d_model), jnp.float32)
    W_U = init_range * jax.random.normal(k_w, (d_model, d_vocab), jnp.float32)
    # Module inits b_U to zeros; use small nonzero values to exercise the bias path.
    b_U = 0.01 * jax.random.normal(k_b, (d_vocab,), jnp.float32)

    out = unembed_forward(x, W_U, b_U)
    out = jax.block_until_ready(out)

    ref = unembed_reference(x, W_U, b_U)
    assert out.shape == (batch, seq, d_vocab)
    assert jnp.allclose(out, ref, atol=1e-5, rtol=1e-5), "Pallas output mismatch vs reference"

    print("KERNEL_OK")
</pallas_src>

<mosaic_0001>
module attributes {stable_mosaic.version = 11 : i64} {
  func.func @_unembed_kernel(%arg0: i32, %arg1: i32, %arg2: i32, %arg3: memref<16x32xf32, #tpu.memory_space<vmem>>, %arg4: memref<32x128xf32, #tpu.memory_space<vmem>>, %arg5: memref<1x128xf32, #tpu.memory_space<vmem>>, %arg6: memref<16x128xf32, #tpu.memory_space<vmem>>, %arg7: memref<16x128xf32, #tpu.memory_space<vmem>>) attributes {dimension_semantics = [#tpu.dimension_semantics<parallel>, #tpu.dimension_semantics<parallel>, #tpu.dimension_semantics<arbitrary>], iteration_bounds = array<i64: 1, 4, 1>, scalar_prefetch = 0 : i64, scratch_operands = 1 : i64, tpu.core_type = #tpu.core_type<tc>, window_params = [{transform_indices = @transform_0, window_bounds = array<i64: 16, 32>}, {transform_indices = @transform_1, window_bounds = array<i64: 32, 128>}, {transform_indices = @transform_2, window_bounds = array<i64: 1, 128>}, {transform_indices = @transform_3, window_bounds = array<i64: 16, 128>}]} {
    %c0_i32 = arith.constant 0 : i32
    %0 = arith.cmpi eq, %arg2, %c0_i32 : i32
    %1 = arith.extui %0 : i1 to i32
    %c0_i32_0 = arith.constant 0 : i32
    %2 = arith.cmpi ne, %1, %c0_i32_0 : i32
    scf.if %2 {
      %cst_10 = arith.constant 0.000000e+00 : f32
      %12 = vector.broadcast %cst_10 : f32 to vector<16x128xf32>
      %c0_11 = arith.constant 0 : index
      %c0_12 = arith.constant 0 : index
      %13 = vector.load %arg7[%c0_11, %c0_12] : memref<16x128xf32, #tpu.memory_space<vmem>>, vector<16x128xf32>
      tpu.vector_store %arg7[%c0_11, %c0_12], %12 {strides = array<i32>} : memref<16x128xf32, #tpu.memory_space<vmem>>, vector<16x128xf32>,
    } else {
    }
    %c0 = arith.constant 0 : index
    %c0_1 = arith.constant 0 : index
    %3 = vector.load %arg7[%c0, %c0_1] : memref<16x128xf32, #tpu.memory_space<vmem>>, vector<16x128xf32>
    %c0_2 = arith.constant 0 : index
    %c0_3 = arith.constant 0 : index
    %4 = vector.load %arg3[%c0_2, %c0_3] : memref<16x32xf32, #tpu.memory_space<vmem>>, vector<16x32xf32>
    %c0_4 = arith.constant 0 : index
    %c0_5 = arith.constant 0 : index
    %5 = vector.load %arg4[%c0_4, %c0_5] : memref<32x128xf32, #tpu.memory_space<vmem>>, vector<32x128xf32>
    %cst = arith.constant dense<0.000000e+00> : vector<16x128xf32>
    %6 = tpu.matmul %4, %5, %cst {dimension_numbers = #tpu.dot_dimension_numbers<[1], [0], [0], [1], [0, 0, 1, 1], [], []>} : vector<16x32xf32>, vector<32x128xf32>, vector<16x128xf32> -> vector<16x128xf32>
    %7 = arith.addf %3, %6 : vector<16x128xf32>
    %c0_6 = arith.constant 0 : index
    %c0_7 = arith.constant 0 : index
    %8 = vector.load %arg7[%c0_6, %c0_7] : memref<16x128xf32, #tpu.memory_space<vmem>>, vector<16x128xf32>
    tpu.vector_store %arg7[%c0_6, %c0_7], %7 {strides = array<i32>} : memref<16x128xf32, #tpu.memory_space<vmem>>, vector<16x128xf32>,
    %c0_i32_8 = arith.constant 0 : i32
    %9 = arith.cmpi eq, %arg2, %c0_i32_8 : i32
    %10 = arith.extui %9 : i1 to i32
    %c0_i32_9 = arith.constant 0 : i32
    %11 = arith.cmpi ne, %10, %c0_i32_9 : i32
    scf.if %11 {
      %c0_10 = arith.constant 0 : index
      %c0_11 = arith.constant 0 : index
      %12 = vector.load %arg7[%c0_10, %c0_11] : memref<16x128xf32, #tpu.memory_space<vmem>>, vector<16x128xf32>
      %c0_12 = arith.constant 0 : index
      %c0_13 = arith.constant 0 : index
      %13 = vector.load %arg5[%c0_12, %c0_13] : memref<1x128xf32, #tpu.memory_space<vmem>>, vector<1x128xf32>
      %14 = vector.broadcast %13 : vector<1x128xf32> to vector<16x128xf32>
      %15 = arith.addf %12, %14 : vector<16x128xf32>
      %c0_14 = arith.constant 0 : index
      %c0_15 = arith.constant 0 : index
      %16 = vector.load %arg6[%c0_14, %c0_15] : memref<16x128xf32, #tpu.memory_space<vmem>>, vector<16x128xf32>
      tpu.vector_store %arg6[%c0_14, %c0_15], %15 {strides = array<i32>} : memref<16x128xf32, #tpu.memory_space<vmem>>, vector<16x128xf32>,
    } else {
    }
    return
  }
  func.func @transform_0(%arg0: i32, %arg1: i32, %arg2: i32) -> (i32, i32) {
    %c0_i32 = arith.constant 0 : i32
    return %arg0, %arg2 : i32, i32
  }
  func.func @transform_1(%arg0: i32, %arg1: i32, %arg2: i32) -> (i32, i32) {
    %c0_i32 = arith.constant 0 : i32
    return %arg2, %arg1 : i32, i32
  }
  func.func @transform_2(%arg0: i32, %arg1: i32, %arg2: i32) -> (i32, i32) {
    %c0_i32 = arith.constant 0 : i32
    %c0_i32_0 = arith.constant 0 : i32
    return %c0_i32, %arg1 : i32, i32
  }
  func.func @transform_3(%arg0: i32, %arg1: i32, %arg2: i32) -> (i32, i32) {
    %c0_i32 = arith.constant 0 : i32
    return %arg0, %arg1 : i32, i32
  }
}

</mosaic_0001>

<bundles_post_ra>
// kernel: tpu_custom_call.1
= control target key start
LH: loop header
LB: loop body
LE: loop exit
PB: predicated region body
PF: predicated region fallthrough
CT: control target
= control target key end

     0   :  { %8 = vsyncpa [#allocation4], 0  ;;  %s1021_s0 = inlined_call_operand.hbm [shape: f32[16,32], index: 0, kind: input, shape index: {}]   ;;  %s1022_s1 = inlined_call_operand.hbm [shape: f32[32,512], index: 1, kind: input, shape index: {}]   ;;  %s1023_s2 = inlined_call_operand.vmem [shape: f32[1,512], index: 2, kind: input, shape index: {}]   ;;  %s1024_s3 = inlined_call_operand.hbm [shape: f32[16,512], index: 3, kind: output, shape index: {}]  }
   0x1   :  { %9 = vsyncpa [#allocation7], 0 }
   0x2   :  { %11 = vsyncpa [#allocation7 + $0x1], 0 }
   0x3   :  { %12 = vsyncpa [#allocation5], 0 }
   0x4   :  { %14 = vsyncpa [#allocation5 + $0x1], 0  ;;  %s799_s12 = smov 0   ;;  %s801_s13 = smov 0  }
   0x5   :  { %s803_s14 = smov 0   ;;  %s805_s15 = smov 0  }
   0x6   :  { %s807_s16 = smov 0   ;;  %s809_s17 = smov 0  }
   0x7 LB: > { %s502_s18 = sadd.s32 4294967295, %s768_s17   ;;  %s503_s19 = sadd.s32 4294967294, %s768_s17   ;;  %s768_s17 = sphi %s809_s17, %s20_s17   ;;  %s764_s16 = sphi %s807_s16, %s1051_s16   ;;  %s760_s15 = sphi %s805_s15, %s1050_s15   ;;  %s756_s14 = sphi %s803_s14, %s1049_s14   ;;  %s752_s13 = sphi %s801_s13, %s1048_s13   ;;  %s748_s12 = sphi %s799_s12, %s1047_s12  }
   0x8   : > { %p83_p0 = scmp.ne.s32.totalorder %s756_s14, %s752_s13  ;;  %p84_p1 = scmp.eq.s32.totalorder %s768_s17, 0 }
   0x9   : > { %p89_p2 = scmp.ne.s32.totalorder %s752_s13, %s748_s12  ;;  %p836_p3 = scmp.eq.s32.totalorder %s502_s18, 0 }
   0xa   : > { %p840_p4 = por %p84_p1, %p83_p0  ;;  %p141_p5 = scmp.eq.s32.totalorder %s502_s18, 3 }
   0xb   : > { %s1032_s20 = scalar_select %p836_p3, 1, 0 }
   0xc   : > { %p846_p6 = por %p836_p3, %p89_p2  ;;  %p147_p7 = scmp.eq.s32.totalorder %s503_s19, 3 }
   0xd   : > { %p850_p8 = por %p141_p5, %p83_p0  ;;  %p504_p9 = scmp.ge.s32.totalorder %s768_s17, 1 }
   0xe   : > { %s1034_s22 = scalar_select %p846_p6, 1, 0 }
   0xf   : > { %s1035_s23 = scalar_select %p850_p8, 1, 0 }
  0x10   : > { %p855_p10 = por %p147_p7, %p89_p2  ;;  %p154_p11 = scmp.lt.s32.totalorder %s768_s17, 5 }
  0x11   : > { %s770_s26 = smov [#allocation3]   ;;  %p566_p0 = scmp.lt.s32.totalorder %s768_s17, 4 }
  0x12   : > { %s1036_s24 = scalar_select %p855_p10, 1, 0 }
  0x13   : > { %p860_p12 = pnand %p504_p9, %p154_p11  ;;  %s170_s27 = sshll.u32 %s770_s26, 4  ;;  %s171_s27 = int_to_ptr.vmem [resolvable:$true] %s170_s27 }
  0x14   : > { %p875_p2 = pnand %p566_p0, %p840_p4  ;;  %s35_s30 = sadd.s32 1, %s764_s16 }
  0x15   : > { %s1037_s25 = scalar_select %p860_p12, 1, 0 }
  0x16   : > { %p553_p13 = pneg %p860_p12  ;;  %s624_s6 = scalar_lea.hbm %s1021_s0, 256 }
  0x17   : > { %s1039_s29 = scalar_select %p875_p2, 1, 0 }
  0x18   : > { %p869_p1 = pnand %p553_p13, %p836_p3  ;;  %p625_p5 = scmp.ne.s32.totalorder %s1021_s0, %s624_s6 }
  0x19   : > { %p631_p4 = scmp.lt.u32.totalorder %s624_s6, %s1021_s0 }
  0x1a   : > { %p626_p7 = pneg %p869_p1 }
  0x1c   : > { %p627_p9 = pnand %p626_p7, %p625_p5 }
  0x1e   : > { %p628_p11 = pneg %p627_p9 }
  0x20   : > { %p633_p13 = pnand %p631_p4, %p628_p11 }
  0x22   : > { %636 = shalt.err (!%p633_p13)
}
  0x23   : > { %s637_s11 = scalar_lea.vmem %s171_s27, 256  ;;  %p645_p6 = scmp.lt.s32.totalorder %s171_s27, %s171_s27 }
  0x24   : > { %p638_p0 = scmp.ne.s32.totalorder %s171_s27, %s637_s11  ;;  %p646_p3 = scmp.lt.s32.totalorder %s637_s11, %s637_s11 }
  0x26   : > { %p640_p10 = pnand %p638_p0, %p626_p7  ;;  %p647_p12 = por %p646_p3, %p645_p6 }
  0x28   : > { %p641_p8 = pneg %p640_p10 }
  0x2a   : > { %p648_p2 = pnand %p647_p12, %p641_p8 }
  0x2c   : > { %651 = shalt.err (!%p648_p2)
}
  0x2d   : > { %s1031_s18 = smov 128   ;;  %s772_s19 = smov 8  }
  0x2e   : > { %556 = dma.hbm_to_vmem [thread:$0]  (!%p869_p1), %s1021_s0, 256, %s171_s27, [#allocation4], %s1031_s18, %s1031_s18, %s772_s19  }
  0x2f   : > { %p37_p10 = scmp.ge.s32.totalorder %s35_s30, 4  ;;  %s76_s4 = sadd.s32 1, %s756_s14 }
  0x30   : > { %s184_s5 = sand.u32 1, %s756_s14   ;;  %s508_s8 = sshll.u32 %s764_s16, 7 }
  0x31   : > { %s1053_s30 = smov (%p37_p10, %s35_s30), 0  ;;  %s507_s6 = sshll.u32 %s184_s5, 5 }
  0x32   : > { %s72_s7 = ssub.s32 %s764_s16, %s1053_s30  ;;  %s909_s10 = scalar_lea.hbm %s1022_s1, %s508_s8 }
  0x33   : > { %p74_p3 = scmp.eq.s32.totalorder %s72_s7, 0  ;;  %s188_s27 = scalar_lea.vmem [#allocation6], %s507_s6 }
  0x34   : > { %s197_s11 = sshll.u32 %s188_s27, 4  ;;  %s916_s26 = scalar_lea.sflag [#allocation7], %s184_s5  ;;  %s914_s11 = int_to_ptr.vmem [resolvable:$true] %s197_s11 }
  0x35   : > { %s912_s21 = scalar_select %p74_p3, %s756_s14, %s76_s4  }
  0x36   : > { %s652_s18 = scalar_lea.hbm %s909_s10, 512  ;;  %p1040_p8 = scmp.ne.s32.totalorder %s1039_s29, 0 }
  0x37   : > { %p653_p6 = scmp.ne.s32.totalorder %s909_s10, %s652_s18  ;;  %s657_s28 = scalar_lea.hbm %s1022_s1, 2048 }
  0x38   : > { %p654_p12 = pneg %p1040_p8  ;;  %p658_p5 = scmp.lt.u32.totalorder %s909_s10, %s1022_s1 }
  0x39   : > { %p659_p7 = scmp.lt.u32.totalorder %s657_s28, %s652_s18  ;;  %p661_p11 = scmp.lt.u32.totalorder %s652_s18, %s909_s10 }
  0x3a   : > { %p655_p1 = pnand %p654_p12, %p653_p6 }
  0x3b   : > { %p660_p9 = por %p659_p7, %p658_p5 }
  0x3c   : > { %p656_p2 = pneg %p655_p1 }
  0x3d   : > { %p662_p4 = por %p661_p11, %p660_p9 }
  0x3f   : > { %p663_p13 = pnand %p662_p4, %p656_p2 }
  0x41   : > { %666 = shalt.err (!%p663_p13)
}
  0x42   : > { %s667_s4 = scalar_lea.vmem %s914_s11, 512  ;;  %s773_s5 = smov [#allocation6]  }
  0x43   : > { %p668_p0 = scmp.ne.s32.totalorder %s914_s11, %s667_s4  ;;  %s672_s27 = sshll.u32 %s773_s5, 4  ;;  %s673_s27 = int_to_ptr.vmem [resolvable:$false] %s672_s27 }
  0x44   : > { %s674_s7 = scalar_lea.vmem %s673_s27, 1024  ;;  %p675_p6 = scmp.lt.s32.totalorder %s914_s11, %s673_s27 }
  0x45   : > { %p670_p10 = pnand %p668_p0, %p654_p12  ;;  %p676_p1 = scmp.lt.s32.totalorder %s674_s7, %s667_s4 }
  0x47   : > { %p671_p3 = pneg %p670_p10  ;;  %p677_p5 = por %p676_p1, %p675_p6 }
  0x49   : > { %p678_p7 = pnand %p677_p5, %p671_p3 }
  0x4b   : > { %681 = shalt.err (!%p678_p7)
}
  0x4c   : > { %s774_s18 = smov 512   ;;  %s1041_s8 = smov 128  }
  0x4d   : > { %560 = dma.hbm_to_vmem [thread:$0]  (!%p1040_p8), %s909_s10, 512, %s914_s11, %s916_s26, %s774_s18, %s1041_s8, %s772_s19  }
  0x4e   : > { %p1042_p12 = scmp.ne.s32.totalorder %s1037_s25, 0 }
  0x4f   : > { %p1043_p2 = scmp.ne.s32.totalorder (!%p1042_p12), %s1032_s20, 0 }
  0x50   : > { %215 = sbr.rel (%p1042_p12) target bundleno = 334 (0x14e), region = 32 }
  0x57   : > { %735 = dma.done.wait (%p1043_p2), [#allocation4], 256  }
  0x58   : > { %737 = vsyncadd (%p1043_p2), [#allocation4], 4294967040  ;;  %s953_s28 = sand.u32 1, %s752_s13   ;;  %p1044_p9 = scmp.ne.s32.totalorder %s1034_s22, 0 }
  0x59   : > { %s511_s29 = sshll.u32 %s953_s28, 5  ;;  %s222_s6 = scalar_lea.sflag [#allocation7], %s953_s28 }
  0x5a   : > { %s225_s9 = scalar_lea.vmem [#allocation6], %s511_s29 }
  0x5b   : > { %739 = dma.done.wait (%p1044_p9), %s222_s6, 512  }
  0x5c   : > { %741 = vsyncadd (%p1044_p9), %s222_s6, 4294966784  ;;  %vm271_vm0 = vcmask 261120   ;;  %v267_v0 = vld [vmem:[%s225_s9] sm:$0xff]  ;;  %v268_v1 = vld [vmem:[%s225_s9 + $0x8] sm:$0xff]  ;;  %p253_p8 = scmp.lt.s32.totalorder %s760_s15, 3  ;;  %s512_s20 = sshll.u32 %s953_s28, 4 }
  0x5d   : > { %v269_v2 = vld [vmem:[%s225_s9 + $0x10] sm:$0xff]  ;;  %v537_v3 = vpack.c.bf16 %v268_v1, %v267_v0  ;;  %v270_v4 = vld [vmem:[%s225_s9 + $0x18] sm:$0xff]  ;;  %s250_s11 = scalar_lea.vmem [#allocation8], %s512_s20  ;;  %s517_s4 = sshll.u32 %s760_s15, 7 }
  0x5e   : > { %v265_v5 = vld [vmem:[#allocation3] sm:$0xff]  ;;  %v541_v6 = vpack.c.bf16 %v270_v4, %v269_v2  ;;  %v266_v7 = vld [vmem:[#allocation3 + $0x8] sm:$0xff]  ;;  %s254_s22 = scalar_select %p253_p8, %s760_s15, 3 }
  0x5f   : > { %534 = vmatprep.mubr.msk.f32.mxu0 %vm271_vm0, %v265_v5  ;;  %538 = vmatprep.subr.bf16.mxu0 %v537_v3  ;;  %s389_s26 = sshll.u32 %s250_s11, 4  ;;  %s973_s7 = scalar_lea.hbm %s1024_s3, %s517_s4  ;;  %s968_s26 = int_to_ptr.vmem [resolvable:$true] %s389_s26 }
  0x60   : > { %540 = vmatpush3.bf16.msra.mxu0 %v537_v3  ;;  %s255_s10 = scalar_lea.vmem %s1023_s2, %s254_s22  ;;  %s374_s18 = scalar_lea.sflag [#allocation5], %s953_s28 }
  0x61   : > { %542 = vmatprep.subr.bf16.mxu0 %v541_v6  ;;  %v515_v8 = vld [vmem:[%s255_s10] ss:$0 sm:$0xff]  ;;  %s682_s8 = scalar_lea.vmem %s968_s26, 256  ;;  %p1045_p4 = scmp.ne.s32.totalorder %s1035_s23, 0 }
  0x62   : > { %p683_p11 = scmp.ne.s32.totalorder %s968_s26, %s682_s8  ;;  %s775_s15 = smov [#allocation8]  }
  0x63   : > { %s686_s29 = sshll.u32 %s775_s15, 4  ;;  %s687_s29 = int_to_ptr.vmem [resolvable:$false] %s686_s29 }
  0x64   : > { %544 = vmatpush3.bf16.msra.mxu0 %v541_v6  ;;  %p684_p13 = pnand %p683_p11, %p1045_p4  ;;  %s688_s6 = scalar_lea.vmem %s687_s29, 512 }
  0x65   : > { %p689_p10 = scmp.lt.s32.totalorder %s968_s26, %s687_s29  ;;  %p690_p3 = scmp.lt.s32.totalorder %s688_s6, %s682_s8 }
  0x66   : > { %p685_p0 = pneg %p684_p13 }
  0x67   : > { %535 = vmatmul.mubr.msk.f32.vlgmr.msra.gmra.mrb[0].mxu0 %vm271_vm0, %v266_v7  ;;  %p691_p6 = por %p690_p3, %p689_p10 }
  0x69   : > { %p692_p1 = pnand %p691_p6, %p685_p0 }
 0x13a   : > { %v536_v9 = vpop.f32.mrb[0].mxu0 }
 0x13b   : > { %v370_v10 = vadd.f32 %v536_v9, %v515_v8  ;;  %v344_v11 = vpop.f32.mrb[1].mxu0 }
 0x13c   : > { %v369_v12 = vadd.f32 %v515_v8, %v344_v11 }
 0x13d   : > { %372 = vst [vmem:[%s250_s11 + $0x8] sm:$0xff] %v370_v10 }
 0x13e   : > { %371 = vst [vmem:[%s250_s11] sm:$0xff] %v369_v12 }
 0x13f   : > { %695 = shalt.err (!%p692_p1)
}
 0x140   : > { %s696_s9 = scalar_lea.hbm %s973_s7, 256  ;;  %s700_s25 = scalar_lea.hbm %s1024_s3, 1024 }
 0x141   : > { %p697_p5 = scmp.ne.s32.totalorder %s973_s7, %s696_s9  ;;  %p701_p2 = scmp.lt.u32.totalorder %s973_s7, %s1024_s3 }
 0x142   : > { %p702_p9 = scmp.lt.u32.totalorder %s700_s25, %s696_s9  ;;  %p704_p11 = scmp.lt.u32.totalorder %s696_s9, %s973_s7 }
 0x143   : > { %p698_p7 = pnand %p697_p5, %p1045_p4 }
 0x144   : > { %p703_p8 = por %p702_p9, %p701_p2 }
 0x145   : > { %p699_p12 = pneg %p698_p7 }
 0x146   : > { %p705_p13 = por %p704_p11, %p703_p8 }
 0x148   : > { %p706_p0 = pnand %p705_p13, %p699_p12 }
 0x14a   : > { %709 = shalt.err (!%p706_p0)
}
 0x14b   : > { %s776_s11 = smov 128   ;;  %s777_s4 = smov 512  }
 0x14c   : > { %s778_s5 = smov 8  }
 0x14d   : > { %551 = dma.vmem_to_hbm [thread:$0]  (%p1045_p4), %s968_s26, 256, %s973_s7, %s374_s18, %s776_s11, %s777_s4, %s778_s5  }
 0x14e PF: > { %p568_p10 = scmp.ge.s32.totalorder %s768_s17, 2  ;;  %s404_s27 = sand.u32 1, %s748_s12  }
 0x14f   : > { %p1046_p3 = scmp.ne.s32.totalorder %s1036_s24, 0  ;;  %s405_s8 = scalar_lea.sflag [#allocation5], %s404_s27 }
 0x151   : > { %p562_p6 = pnand %p568_p10, %p1046_p3 }
 0x153   : > { %743 = dma.done.wait (!%p562_p6), %s405_s8, 256  }
 0x154   : > { %745 = vsyncadd (!%p562_p6), %s405_s8, 4294967040  ;;  %s20_s17 = sadd.s32 1, %s768_s17   ;;  %s1047_s12 = smov %s752_s13 }
 0x155   : > { %p17_p1 = scmp.ge.s32.totalorder %s20_s17, 6   ;;  %s1048_s13 = smov %s756_s14 }
 0x156   : > { %s1049_s14 = smov %s912_s21  ;;  %s1050_s15 = smov %s764_s16 }
 0x157   : > { %s1051_s16 = smov %s1053_s30  ;;  %19 = sbr.rel (!%p17_p1) target bundleno = 7 (0x7), region = 94 }
 0x15e   :  { %410 = vsyncpa [#allocation4], 1 }
 0x15f   :  { %412 = vsyncpa [#allocation4 + $0x1], 1 }
 0x160   :  { %413 = vsyncpa [#allocation7], 1 }
 0x161   :  { %415 = vsyncpa [#allocation7 + $0x1], 1 }
 0x162   :  { %416 = vsyncpa [#allocation5], 1 }
 0x163   :  { %418 = vsyncpa [#allocation5 + $0x1], 1 }

</bundles_post_ra>
